<compile_context>
chip_gen: v6e
topology: v6e:2x2x1
jax: 0.10.0
libtpu: 0.0.40
codegen_flags: <defaults>
</compile_context>

<pallas_src>
import functools

import jax
import jax.numpy as jnp
from jax.experimental import pallas as pl
from jax.experimental.pallas import tpu as pltpu


MXU_BF16 = True                       # bf16 MXU operands, f32 accumulation (v6e/v7x)
VMEM_LIMIT_BYTES = 32 * 1024 * 1024   # safe scoped-VMEM budget on v5e/v6e/v7x


# ----------------------------------------------------------------------------
# Kernel 1: projection (x @ W, fused attention-logit matmul)
# ----------------------------------------------------------------------------
def _gat_project_kernel(x_ref, w_ref, a_ref, xw_ref, asrc_t_ref, adst_ref, *, heads):
    xw = jnp.dot(x_ref[...], w_ref[...], preferred_element_type=jnp.float32)   # [N, H*D]
    # att vectors packed block-diagonally as [H*D, 2H]: one matmul gives both
    # the per-head src and dst logits.
    alpha = jnp.dot(xw, a_ref[...], preferred_element_type=jnp.float32)        # [N, 2H]
    alpha_t = jnp.transpose(alpha)                                             # [2H, N]
    xw_ref[...] = xw.astype(xw_ref.dtype)        # bf16 when MXU_BF16 (halves VMEM/HBM)
    asrc_t_ref[...] = alpha_t[:heads, :]         # [H, N]  (src logits, transposed once)
    adst_ref[...] = alpha[:, heads:]             # [N, H]  (dst logits)


# ----------------------------------------------------------------------------
# Kernel 2: masked attention + aggregation + BN + residual + ELU, tiled over dst
# ----------------------------------------------------------------------------
def _gat_attn_kernel(xw_ref, asrc_t_ref, adst_ref, adj_ref, x_res_ref,
                     bn_scale_ref, bn_shift_ref, out_ref,
                     *, heads, d_head, apply_elu, add_residual,
                     negative_slope=0.2):
    xw = xw_ref[...]                              # [N_src, H*D] (bf16 or f32, resident)
    a_src_t = asrc_t_ref[...]                     # [H, N_src]   (resident)
    a_dst = adst_ref[...]                         # [T, H]       (dst tile)
    mask = adj_ref[...] > 0                       # [T, N_src]   hoisted once per tile
    neg_big = jnp.float32(-1e30)

    head_outs = []
    for h in range(heads):                        # static unrolled, H small
        e = a_dst[:, h:h + 1] + a_src_t[h:h + 1, :]          # [T, S]
        e = jnp.where(e > 0, e, negative_slope * e)          # LeakyReLU(0.2), f32
        e = jnp.where(mask, e, neg_big)                      # single mask select
        e_max = jnp.max(e, axis=-1, keepdims=True)
        p = jnp.exp(e - e_max)                               # masked entries -> exactly 0
        denom = jnp.sum(p, axis=-1, keepdims=True)
        denom = jnp.maximum(denom, jnp.float32(1e-30))       # guard isolated rows (no NaN)
        # Unnormalized aggregation on the MXU (bf16 operands, f32 accumulate),
        # normalize afterwards over D with an EUP reciprocal instead of an
        # [T, S] VPU divide.
        out_h = jnp.dot(p.astype(xw.dtype), xw[:, h * d_head:(h + 1) * d_head],
                        preferred_element_type=jnp.float32)  # [T, D]
        out_h = out_h * pl.reciprocal(denom, approx=True)
        head_outs.append(out_h)
    # TODO(synk): for larger d_head / N, fuse the H narrow [T,S]@[S,D] matmuls
    # into one block-diagonal [T, H*S]@[H*S, H*D] matmul to fill the MXU width.

    out = jnp.concatenate(head_outs, axis=-1)                # [T, H*D], one slab
    out = out * bn_scale_ref[...] + bn_shift_ref[...]        # BN(eval) + folded GAT bias
    if add_residual:
        out = out + x_res_ref[...]                           # identity residual
    if apply_elu:
        out = jnp.where(out > 0, out, jnp.exp(out) - 1.0)    # F.elu
    # TODO(synk): F.dropout between layers is identity in eval mode; no kernel op.
    out_ref[...] = out                                       # single lane-dense store


# ----------------------------------------------------------------------------
# Wrappers
# ----------------------------------------------------------------------------
def _pick_dst_tile(n):
    for t in (512, 256, 128, 64, 32, 16, 8):
        if n % t == 0:
            return t
    return n


def gat_layer_pallas(x, p, adj_bf16, *, heads, apply_elu, add_residual, tile_dst=None):
    n, f_in = x.shape
    hd = p["w"].shape[1]
    d_head = hd // heads
    if tile_dst is None:
        tile_dst = _pick_dst_tile(n)
    assert n % tile_dst == 0, "N must be a multiple of the dst tile"

    xw_dtype = jnp.bfloat16 if MXU_BF16 else jnp.float32

    # ---- projection: one small gridless call, everything resident in VMEM ----
    xw, asrc_t, adst = pl.pallas_call(
        functools.partial(_gat_project_kernel, heads=heads),
        out_shape=(jax.ShapeDtypeStruct((n, hd), xw_dtype),
                   jax.ShapeDtypeStruct((heads, n), jnp.float32),
                   jax.ShapeDtypeStruct((n, heads), jnp.float32)),
        in_specs=[pl.BlockSpec(memory_space=pltpu.MemorySpace.VMEM)] * 3,
        out_specs=(pl.BlockSpec(memory_space=pltpu.MemorySpace.VMEM),) * 3,
    )(x, p["w"], p["a_both"])

    # ---- attention: grid over destination tiles, pipelined adj/x/out DMAs ----
    kernel = functools.partial(
        _gat_attn_kernel, heads=heads, d_head=d_head,
        apply_elu=apply_elu, add_residual=add_residual)
    # TODO(synk): for very large N add a src-tile grid axis with a flash-style
    # online softmax (running max/denom/acc scratch) so the working set is
    # [TILE_DST, TILE_SRC] instead of [TILE_DST, N] — required for v7x's 64 MiB VMEM.
    # TODO(synk): for sparse graphs (E << N^2) a CSR/gather kernel with
    # PrefetchScalarGridSpec neighbor offsets avoids the dense O(N^2) work.
    out = pl.pallas_call(
        kernel,
        out_shape=jax.ShapeDtypeStruct((n, hd), jnp.float32),
        grid_spec=pltpu.PrefetchScalarGridSpec(
            num_scalar_prefetch=0,
            grid=(n // tile_dst,),
            in_specs=[
                pl.BlockSpec((n, hd), lambda i: (0, 0)),            # xw (resident)
                pl.BlockSpec((heads, n), lambda i: (0, 0)),         # alpha_src^T (resident)
                pl.BlockSpec((tile_dst, heads), lambda i: (i, 0)),  # alpha_dst tile
                pl.BlockSpec((tile_dst, n), lambda i: (i, 0)),      # adj tile (bf16)
                pl.BlockSpec((tile_dst, f_in), lambda i: (i, 0)),   # x tile (residual)
                pl.BlockSpec((1, hd), lambda i: (0, 0)),            # bn_scale
                pl.BlockSpec((1, hd), lambda i: (0, 0)),            # bn_shift (+bias folded)
            ],
            out_specs=pl.BlockSpec((tile_dst, hd), lambda i: (i, 0)),
        ),
        compiler_params=pltpu.CompilerParams(
            dimension_semantics=("parallel",),        # shards dst tiles across TCs (v7x)
            vmem_limit_bytes=VMEM_LIMIT_BYTES,
        ),
    )(xw, asrc_t, adst, adj_bf16, x, p["bn_scale"], p["bn_shift_eff"])
    return out


def gat_block_pallas(x, adj_bf16, params, *, heads, tile_dst=None):
    num_layers = len(params)
    for i, p in enumerate(params):
        last = i == num_layers - 1
        x = gat_layer_pallas(
            x, p, adj_bf16, heads=heads,
            apply_elu=not last,                  # ELU only between layers
            add_residual=(i > 0),                # layer 0: use_residual=False
            tile_dst=tile_dst)
    return x


# ----------------------------------------------------------------------------
# Parameter setup (glue, plain JAX)
# ----------------------------------------------------------------------------
def _pack_att(att):
    """[H, D] attention vector -> block-diagonal [H*D, H] matmul operand."""
    h, d = att.shape
    m = att[:, :, None] * jnp.eye(h, dtype=att.dtype)[:, None, :]   # [H, D, H]
    return m.reshape(h * d, h)


def init_gat_layer(key, in_ch, out_ch, heads):
    d = out_ch // heads
    ks = jax.random.split(key, 8)
    glorot_w = (2.0 / (in_ch + heads * d)) ** 0.5
    glorot_a = (2.0 / (1 + d)) ** 0.5
    w = glorot_w * jax.random.normal(ks[0], (in_ch, heads * d), jnp.float32)
    att_src = glorot_a * jax.random.normal(ks[1], (heads, d), jnp.float32)
    att_dst = glorot_a * jax.random.normal(ks[2], (heads, d), jnp.float32)
    # Non-trivial bias / BN stats so the folded epilogue is actually exercised.
    bias = 0.1 * jax.random.normal(ks[3], (out_ch,), jnp.float32)
    gamma = 1.0 + 0.1 * jax.random.normal(ks[4], (out_ch,), jnp.float32)
    beta = 0.1 * jax.random.normal(ks[5], (out_ch,), jnp.float32)
    r_mean = 0.1 * jax.random.normal(ks[6], (out_ch,), jnp.float32)
    r_var = jax.random.uniform(ks[7], (out_ch,), jnp.float32, minval=0.5, maxval=1.5)
    eps = 1e-5
    bn_scale = gamma / jnp.sqrt(r_var + eps)
    bn_shift = beta - r_mean * bn_scale
    # Fold the GATConv bias into the BN shift: (y + b)*s + t == y*s + (b*s + t).
    bn_shift_eff = bias * bn_scale + bn_shift
    # Fuse src/dst attention projections into one [H*D, 2H] operand.
    a_both = jnp.concatenate([_pack_att(att_src), _pack_att(att_dst)], axis=1)
    return {
        "w": w, "att_src": att_src, "att_dst": att_dst, "a_both": a_both,
        "bias": bias, "gamma": gamma, "beta": beta,
        "r_mean": r_mean, "r_var": r_var, "eps": eps,
        "bn_scale": bn_scale.reshape(1, -1),
        "bn_shift_eff": bn_shift_eff.reshape(1, -1),
    }


# ----------------------------------------------------------------------------
# Pure-JAX reference (numerical check; mirrors the kernel's bf16 MXU operands)
# ----------------------------------------------------------------------------
def gat_layer_ref(x, p, adj, *, heads, apply_elu, add_residual):
    n = x.shape[0]
    hd = p["w"].shape[1]
    d = hd // heads
    xw = x @ p["w"]
    xw3 = xw.reshape(n, heads, d)
    a_src = (xw3 * p["att_src"][None]).sum(-1)       # [N, H]
    a_dst = (xw3 * p["att_dst"][None]).sum(-1)       # [N, H]
    e = a_dst[:, None, :] + a_src[None, :, :]        # [dst, src, H]
    e = jnp.where(e > 0, e, 0.2 * e)
    mask = (adj > 0)[:, :, None]
    e = jnp.where(mask, e, -jnp.inf)
    attn = jax.nn.softmax(e, axis=1)
    attn = jnp.where(mask, attn, 0.0)
    xw3m = xw3
    if MXU_BF16:                                     # match the kernel's MXU precision
        attn = attn.astype(jnp.bfloat16)
        xw3m = xw3.astype(jnp.bfloat16)
    out = jnp.einsum("dsh,shk->dhk", attn, xw3m,
                     preferred_element_type=jnp.float32).reshape(n, hd)
    out = out + p["bias"][None, :]
    out = (out - p["r_mean"]) / jnp.sqrt(p["r_var"] + p["eps"]) * p["gamma"] + p["beta"]
    if add_residual:
        out = out + x
    if apply_elu:
        out = jax.nn.elu(out)
    return out


def gat_block_ref(x, adj, params, *, heads):
    for i, p in enumerate(params):
        last = i == len(params) - 1
        x = gat_layer_ref(x, p, adj, heads=heads,
                          apply_elu=not last, add_residual=(i > 0))
    return x


# ----------------------------------------------------------------------------
if __name__ == "__main__":
    key = jax.random.PRNGKey(0)
    N, IN_CH, HIDDEN, HEADS, NUM_LAYERS, E = 16, 8, 32, 8, 2, 40
    TILE_DST = 8   # 2 dst tiles -> exercises the pipelined "parallel" grid

    k_x, k_src, k_dst, k_w, k_p = jax.random.split(key, 5)
    x = jax.random.normal(k_x, (N, IN_CH), jnp.float32)

    # Random directed graph (edge_index equivalent) -> dense adjacency w/ self loops.
    src = jax.random.randint(k_src, (E,), 0, N)
    dst = jax.random.randint(k_dst, (E,), 0, N)
    edge_weight = jax.random.uniform(k_w, (E,))      # accepted but output-neutral (see note)
    adj = jnp.zeros((N, N), jnp.float32).at[dst, src].set(1.0)
    adj = adj.at[jnp.arange(N), jnp.arange(N)].set(1.0)   # add_self_loops=True
    adj_bf16 = adj.astype(jnp.bfloat16)              # mask-only usage -> half the bytes

    # Layer params: layer0 (in -> hidden), layer1 (hidden -> hidden)
    keys = jax.random.split(k_p, NUM_LAYERS)
    params = [init_gat_layer(keys[0], IN_CH, HIDDEN, HEADS)]
    for li in range(1, NUM_LAYERS):
        params.append(init_gat_layer(keys[li], HIDDEN, HIDDEN, HEADS))

    out = gat_block_pallas(x, adj_bf16, params, heads=HEADS, tile_dst=TILE_DST)
    out = jax.block_until_ready(out)

    ref = gat_block_ref(x, adj_bf16, params, heads=HEADS)
    assert out.shape == (N, HIDDEN)
    max_err = float(jnp.max(jnp.abs(out - ref)))
    # Tolerance covers bf16 MXU operands + approx EUP reciprocal vs the f32-softmax ref.
    assert jnp.allclose(out, ref, atol=3e-2, rtol=3e-2), \
        f"mismatch vs JAX reference (max abs err {max_err})"

    print("KERNEL_OK")
</pallas_src>

<mosaic_0001>
module attributes {stable_mosaic.version = 11 : i64} {
  func.func @_gat_project_kernel(%arg0: memref<16x8xf32, #tpu.memory_space<vmem>>, %arg1: memref<8x32xf32, #tpu.memory_space<vmem>>, %arg2: memref<32x16xf32, #tpu.memory_space<vmem>>, %arg3: memref<16x32xbf16, #tpu.memory_space<vmem>>, %arg4: memref<8x16xf32, #tpu.memory_space<vmem>>, %arg5: memref<16x8xf32, #tpu.memory_space<vmem>>) attributes {dimension_semantics = [], scalar_prefetch = 0 : i64, scratch_operands = 0 : i64, tpu.core_type = #tpu.core_type<tc>} {
    %c0 = arith.constant 0 : index
    %c0_0 = arith.constant 0 : index
    %0 = vector.load %arg0[%c0, %c0_0] : memref<16x8xf32, #tpu.memory_space<vmem>>, vector<16x8xf32>
    %c0_1 = arith.constant 0 : index
    %c0_2 = arith.constant 0 : index
    %1 = vector.load %arg1[%c0_1, %c0_2] : memref<8x32xf32, #tpu.memory_space<vmem>>, vector<8x32xf32>
    %cst = arith.constant dense<0.000000e+00> : vector<16x32xf32>
    %2 = tpu.matmul %0, %1, %cst {dimension_numbers = #tpu.dot_dimension_numbers<[1], [0], [0], [1], [0, 0, 1, 1], [], []>} : vector<16x8xf32>, vector<8x32xf32>, vector<16x32xf32> -> vector<16x32xf32>
    %c0_3 = arith.constant 0 : index
    %c0_4 = arith.constant 0 : index
    %3 = vector.load %arg2[%c0_3, %c0_4] : memref<32x16xf32, #tpu.memory_space<vmem>>, vector<32x16xf32>
    %cst_5 = arith.constant dense<0.000000e+00> : vector<16x16xf32>
    %4 = tpu.matmul %2, %3, %cst_5 {dimension_numbers = #tpu.dot_dimension_numbers<[1], [0], [0], [1], [0, 0, 1, 1], [], []>} : vector<16x32xf32>, vector<32x16xf32>, vector<16x16xf32> -> vector<16x16xf32>
    %5 = tpu.transpose %4, [1, 0] : vector<16x16xf32> -> vector<16x16xf32>
    %6 = arith.truncf %2 : vector<16x32xf32> to vector<16x32xbf16>
    %c0_6 = arith.constant 0 : index
    %c0_7 = arith.constant 0 : index
    %7 = vector.load %arg3[%c0_6, %c0_7] : memref<16x32xbf16, #tpu.memory_space<vmem>>, vector<16x32xbf16>
    tpu.vector_store %arg3[%c0_6, %c0_7], %6 {strides = array<i32>} : memref<16x32xbf16, #tpu.memory_space<vmem>>, vector<16x32xbf16>,
    %8 = vector.extract_strided_slice %5 {offsets = [0, 0], sizes = [8, 16], strides = [1, 1]} : vector<16x16xf32> to vector<8x16xf32>
    %c0_8 = arith.constant 0 : index
    %c0_9 = arith.constant 0 : index
    %9 = vector.load %arg4[%c0_8, %c0_9] : memref<8x16xf32, #tpu.memory_space<vmem>>, vector<8x16xf32>
    tpu.vector_store %arg4[%c0_8, %c0_9], %8 {strides = array<i32>} : memref<8x16xf32, #tpu.memory_space<vmem>>, vector<8x16xf32>,
    %10 = vector.extract_strided_slice %4 {offsets = [0, 8], sizes = [16, 8], strides = [1, 1]} : vector<16x16xf32> to vector<16x8xf32>
    %c0_10 = arith.constant 0 : index
    %c0_11 = arith.constant 0 : index
    %11 = vector.load %arg5[%c0_10, %c0_11] : memref<16x8xf32, #tpu.memory_space<vmem>>, vector<16x8xf32>
    tpu.vector_store %arg5[%c0_10, %c0_11], %10 {strides = array<i32>} : memref<16x8xf32, #tpu.memory_space<vmem>>, vector<16x8xf32>,
    return
  }
}

</mosaic_0001>

<bundles_post_ra>
// kernel: tpu_custom_call.1
= control target key start
LH: loop header
LB: loop body
LE: loop exit
PB: predicated region body
PF: predicated region fallthrough
CT: control target
= control target key end

     0   :  { %11 = vsyncpa [#allocation3], 0  ;;  %vm22_vm0 = vcmask 64512   ;;  %s434_s0 = inlined_call_operand.vmem [shape: f32[16,8], index: 0, kind: input, shape index: {}]   ;;  %s435_s1 = inlined_call_operand.vmem [shape: f32[8,32], index: 1, kind: input, shape index: {}]   ;;  %s436_s2 = inlined_call_operand.vmem [shape: f32[32,16], index: 2, kind: input, shape index: {}]   ;;  %s437_s3 = inlined_call_operand.hbm [shape: bf16[16,32], index: 3, kind: output, shape index: {0}]   ;;  %s438_s4 = inlined_call_operand.hbm [shape: f32[8,16], index: 4, kind: output, shape index: {1}]   ;;  %s439_s5 = inlined_call_operand.vmem [shape: f32[16,8], index: 5, kind: output, shape index: {2}]  }
   0x1   :  { %v21_v0 = vld [vmem:[%s435_s1] sm:$0xff]  ;;  %v20_v2 = vld [vmem:[%s434_s0 + $0x8] sm:$0xff]  ;;  %v107_v3 = vld [vmem:[%s436_s2 + $0x18] sm:$0xff] }
   0x2   :  { %v19_v1 = vld [vmem:[%s434_s0] sm:$0xff]  ;;  %296 = vmatprep.subr.mxu0 %v21_v0  ;;  %v106_v4 = vld [vmem:[%s436_s2 + $0x10] sm:$0xff] }
   0x3   :  { %298 = vmatprep.mubr.msk.f32.mxu0 %vm22_vm0, %v19_v1 }
   0x4   :  { %12 = vsyncpa [#allocation5], 0  ;;  %297 = vmatpush3.msra.mxu0 %v21_v0  ;;  %301 = vmatprep.subr.mxu1 %v107_v3  ;;  %v105_v5 = vld [vmem:[%s436_s2 + $0x8] sm:$0xff]  ;;  %v104_v6 = vld [vmem:[%s436_s2] sm:$0xff]  ;;  %vm230_vm1 = vcmask 257024   ;;  %vm108_vm2 = vcmask 261120  }
   0x5   :  { %299 = vmatmul.mubr.msk.f32.vlgmr.msra.gmra.mxu0 %vm22_vm0, %v20_v2  ;;  %302 = vmatpush3.msra.mxu1 %v107_v3  ;;  %s362_s30 = smov [#allocation2]  }
   0x6   :  { %303 = vmatprep.subr.mxu1 %v106_v4  ;;  %s250_s6 = sshll.u32 %s362_s30, 4  ;;  %s251_s6 = int_to_ptr.vmem [resolvable:$true] %s250_s6 }
   0x7   :  { %304 = vmatpush3.msra.mxu1 %v106_v4  ;;  %s318_s7 = scalar_lea.vmem %s251_s6, 128  ;;  %p323_p1 = scmp.lt.s32.totalorder %s251_s6, %s251_s6 }
   0x8   :  { %305 = vmatprep.subr.mxu1 %v105_v5  ;;  %p319_p0 = scmp.ne.s32.totalorder %s251_s6, %s318_s7  ;;  %p324_p2 = scmp.lt.s32.totalorder %s318_s7, %s318_s7 }
   0x9   :  { %306 = vmatpush3.msra.mxu1 %v105_v5 }
   0xa   :  { %307 = vmatprep.subr.mxu1 %v104_v6  ;;  %p325_p3 = por %p324_p2, %p323_p1 }
   0xb   :  { %308 = vmatpush3.msra.mxu1 %v104_v6 }
   0xc   :  { %p326_p4 = pnand %p325_p3, %p319_p0 }
  0xc5   :  { %v300_v7 = vpop.f32.mrf.mxu0 }
  0xc6   :  { %v286_v8 = vpack.c.bf16 %v300_v7, %v300_v7 }
  0xc7   :  { %v95_v9 = vpop.f32.mrf.mxu0 }
  0xc8   :  { %v285_v10 = vpack.c.bf16 %v95_v9, %v95_v9  ;;  %232 = vst.msk [vmem:[#allocation2 + $0x4] sm:$0xf] %vm230_vm1, %v286_v8  ;;  %309 = vmatprep.mubr.msk.f32.mxu1 %vm108_vm2, %v95_v9 }
  0xc9   :  { %310 = vmatmul.mubr.msk.f32.vlgmr.msra.gmra.mxu1 %vm108_vm2, %v300_v7 }
  0xca   :  { %231 = vst.msk [vmem:[#allocation2] sm:$0xf] %vm230_vm1, %v285_v10 }
 0x189   :  { %v311_v11 = vpop.f32.mrf.mxu1 }
 0x18b   :  { %v181_v12 = vpop.f32.mrf.mxu1 }
 0x18c   :  { %329 = shalt.err (!%p326_p4)
}
 0x18d   :  { %s363_s2 = smov 64   ;;  %s364_s8 = smov 4   ;;  %190 = vxpose.xlu1.b32.start [1/2] (short) (narrow) %v181_v12, 8  ;;  %vm233_vm3 = vcmask 130048  }
 0x18e   :  { %256 = dma.vmem_to_hbm [thread:$0]  %s251_s6, 128, %s437_s3, [#allocation3], %s363_s2, %s363_s2, %s364_s8  }
 0x18f   :  { %s365_s11 = smov 120   ;;  %s366_s16 = smov [#allocation4]  }
 0x190   :  { %237 = vrot.lane.b32.xlu0 %v181_v12, %s365_s11  ;;  %s263_s17 = sshll.u32 %s366_s16, 4  ;;  %s264_s17 = int_to_ptr.vmem [resolvable:$true] %s263_s17 }
 0x191   :  { %191 = vxpose.xlu1.b32.end [2/2] (short) (narrow) %v311_v11, 8  ;;  %s338_s3 = scalar_lea.vmem %s264_s17, 128  ;;  %p343_p6 = scmp.lt.s32.totalorder %s264_s17, %s264_s17 }
 0x192   :  { %p339_p5 = scmp.ne.s32.totalorder %s264_s17, %s338_s3  ;;  %p344_p7 = scmp.lt.s32.totalorder %s338_s3, %s338_s3 }
 0x194   :  { %239 = vrot.lane.b32.xlu0 %v311_v11, %s365_s11  ;;  %p345_p8 = por %p344_p7, %p343_p6 }
 0x196   :  { %p346_p9 = pnand %p345_p8, %p339_p5 }
 0x202   :  { %v238_v13 = vpop.permute.xlu0 %237 }
 0x203   :  { %243 = vst.msk [vmem:[%s439_s5] sm:$0xff] %vm22_vm0, %v238_v13 }
 0x206   :  { %v240_v14 = vpop.permute.xlu0 %239 }
 0x207   :  { %244 = vst.msk [vmem:[%s439_s5 + $0x8] sm:$0xff] %vm22_vm0, %v240_v14 }
 0x209   :  { %v206_v15 = vpop.trf.xlu1 }
 0x20a   :  { %234 = vst.msk [vmem:[#allocation4] sm:$0xff] %vm233_vm3, %v206_v15 }
 0x20b   :  { %349 = shalt.err (!%p346_p9)
}
 0x20c   :  { %266 = dma.vmem_to_hbm [thread:$0]  %s264_s17, 128, %s438_s4, [#allocation5]  }
 0x20d   :  { %358 = dma.done.wait [#allocation3], 128  }
 0x20e   :  { %359 = vsyncadd [#allocation3], 4294967168 }
 0x20f   :  { %360 = dma.done.wait [#allocation5], 128  }
 0x210   :  { %361 = vsyncadd [#allocation5], 4294967168 }
 0x211   :  { %277 = vsyncpa [#allocation3], 1 }
 0x212   :  { %278 = vsyncpa [#allocation5], 1 }

</bundles_post_ra>
